<compile_context>
chip_gen: v7x
topology: tpu7x:2x2x1
jax: 0.10.0
libtpu: 0.0.40
codegen_flags: <defaults>
</compile_context>

<pallas_src>
from functools import partial

import jax
import jax.numpy as jnp
from jax.experimental import pallas as pl
from jax.experimental.pallas import tpu as pltpu


def _round_up(v, m):
    return -(-v // m) * m


def _hw_tile(hw, cap=2048):
    """Largest multiple-of-128 divisor of hw that is <= cap (else hw)."""
    if hw <= cap:
        return hw
    t = (cap // 128) * 128
    while t >= 128 and hw % t:
        t -= 128
    return t if t >= 128 else hw


# --------------------------------------------------------------------------
# Pass 1: 3x3 conv as lane-dense (grouped) im2col MXU matmuls + BN partials
# --------------------------------------------------------------------------
def conv_stats_kernel(x_ref, w_ref, mask_ref, y_ref, sum_ref, sumsq_ref,
                      col_ref, *, H, W, taps_per_group):
    """One grid step = one batch image.

    x_ref     : (1, Cin, PADLEN)  flat NC(HW) input, flat axis zero-padded by
                                  W+1 on the left (halo handled in-kernel).
    w_ref     : (CO_P, 9*Cin)     weights; rows = out channels (padded to x8),
                                  cols ordered (kh, kw, ci).
    mask_ref  : (2, HW)           {0,1} masks for dw = -1 / +1 taps
                                  (kill row-wrap garbage).
    y_ref     : (1, CO_P, HW)     pre-BN conv output, HW on lanes (bf16/f32).
    sum_ref   : (1, CO_P, 1)      per-image  sum_hw y     (f32).
    sumsq_ref : (1, CO_P, 1)      per-image  sum_hw y^2   (f32).
    col_ref   : (tpg*Cin, HW)     im2col buffer for one tap group (scratch).
    """
    cin = x_ref.shape[1]
    hw = H * W
    pad_l = W + 1
    gk = taps_per_group * cin
    n_groups = 9 // taps_per_group

    acc = None
    for g in range(n_groups):
        # Build one tap group of the im2col matrix.  Every store writes Cin
        # full sublane rows x HW lanes (multiple of 128) -> unmasked vst.
        for i in range(taps_per_group):
            t = g * taps_per_group + i
            dh, dw = t // 3 - 1, t % 3 - 1
            start = pad_l + dh * W + dw                       # static, >= 0
            shifted = x_ref[0, :, start:start + hw]           # (Cin, HW)
            if dw == -1:
                shifted = shifted * mask_ref[0:1, :]
            elif dw == 1:
                shifted = shifted * mask_ref[1:2, :]
            col_ref[i * cin:(i + 1) * cin, :] = shifted

        # One MXU contraction per tap group, f32 accumulation:
        #   (CO_P, gk) @ (gk, HW) -> (CO_P, HW)
        part = jax.lax.dot_general(
            w_ref[:, g * gk:(g + 1) * gk], col_ref[...],
            dimension_numbers=(((1,), (0,)), ((), ())),
            preferred_element_type=jnp.float32)
        acc = part if acc is None else acc + part

    # Statistics come from the f32 accumulator BEFORE the (possibly bf16)
    # store, so the narrower y stream never perturbs the BN statistics.
    y_ref[0] = acc.astype(y_ref.dtype)
    sum_ref[0] = jnp.sum(acc, axis=1, keepdims=True)
    sumsq_ref[0] = jnp.sum(acc * acc, axis=1, keepdims=True)


# --------------------------------------------------------------------------
# Pass 2: normalize with *global* batch statistics + ReLU (lane-dense, NCHW)
# --------------------------------------------------------------------------
def bn_relu_kernel(y_ref, scale_ref, shift_ref, o_ref):
    """y/o: (1, CO_P, THW); scale/shift: (CO_P, 1) folded BN parameters."""
    y = y_ref[0].astype(jnp.float32)
    o_ref[0] = jnp.maximum(y * scale_ref[...] + shift_ref[...], 0.0)


# --------------------------------------------------------------------------
# Wrapper: NCHW in / NCHW out, matching the PyTorch module semantics.
# --------------------------------------------------------------------------
@partial(jax.jit, static_argnames=("use_bf16", "taps_per_group"))
def conv_bn_relu_forward(x_nchw, weight_oihw, bias, gamma, beta,
                         use_bf16=True, taps_per_group=None):
    del bias  # Conv bias is a mathematical no-op under training-mode BN
    #           (the reference keeps it to prove equivalence).  Only valid for
    #           train-mode BN; eval-mode BN would need the bias folded in.

    B, Cin, H, W = x_nchw.shape
    Cout = weight_oihw.shape[0]
    HW = H * W
    CO_P = _round_up(Cout, 8)                 # sublane-tile padded out channels
    cdt = jnp.bfloat16 if use_bf16 else jnp.float32
    if taps_per_group is None:
        # Cin-dependent strategy: full im2col (one K=9*Cin matmul) for the
        # small-Cin stem; kh-row groups (3 matmuls, K=3*Cin) for large Cin so
        # the col scratch stays small and the MXU contraction stays deep.
        taps_per_group = 9 if Cin < 64 else 3
    gk = taps_per_group * Cin

    pad_l = W + 1
    padlen = _round_up(HW + 2 * pad_l, 128)

    # --- layout glue: ONE fused pass over x (reshape is free; halo pad and
    # dtype cast fuse into a single copy; no NCHW->NHWC transpose, no 2-D pad).
    x_flat = x_nchw.reshape(B, Cin, HW).astype(cdt)
    x_pad = jnp.pad(x_flat, ((0, 0), (0, 0), (pad_l, padlen - HW - pad_l)))

    # OIHW -> (CO_P, 9*Cin), columns ordered (kh, kw, ci).
    w = jnp.transpose(weight_oihw, (0, 2, 3, 1)).reshape(Cout, 9 * Cin)
    w = jnp.pad(w, ((0, CO_P - Cout), (0, 0))).astype(cdt)

    # {0,1} masks for the horizontally shifted taps (dw = -1 / +1).
    w_idx = jnp.arange(HW, dtype=jnp.int32) % W
    masks = jnp.stack([w_idx >= 1, w_idx <= W - 2]).astype(cdt)     # (2, HW)

    kern = partial(conv_stats_kernel, H=H, W=W, taps_per_group=taps_per_group)

    # --- pass 1: conv + per-image partial BN statistics (parallel over B) ----
    # TODO(synk): at real CTCNet sizes add an HW grid axis (halo via manual
    # DMA) so per-step VMEM stays < 64 MiB on v7x; raise vmem_limit_bytes /
    # use pipeline_mode=pl.Buffered(3) for the bigger tiles on v5e/v6e.
    y, s1, s2 = pl.pallas_call(
        kern,
        grid_spec=pltpu.PrefetchScalarGridSpec(
            num_scalar_prefetch=0,
            grid=(B,),
            in_specs=[
                pl.BlockSpec((1, Cin, padlen), lambda b: (b, 0, 0)),
                pl.BlockSpec((CO_P, 9 * Cin), lambda b: (0, 0)),
                pl.BlockSpec((2, HW), lambda b: (0, 0)),
            ],
            out_specs=[
                pl.BlockSpec((1, CO_P, HW), lambda b: (b, 0, 0)),
                pl.BlockSpec((1, CO_P, 1), lambda b: (b, 0, 0)),
                pl.BlockSpec((1, CO_P, 1), lambda b: (b, 0, 0)),
            ],
            scratch_shapes=[pltpu.VMEM((gk, HW), cdt)],
        ),
        out_shape=(
            jax.ShapeDtypeStruct((B, CO_P, HW), cdt),   # bf16 y halves the HBM
            jax.ShapeDtypeStruct((B, CO_P, 1), jnp.float32),
            jax.ShapeDtypeStruct((B, CO_P, 1), jnp.float32),
        ),
        compiler_params=pltpu.CompilerParams(
            dimension_semantics=("parallel",),
            vmem_limit_bytes=32 * 1024 * 1024),
    )(x_pad, w, masks)

    # --- global BN statistics (tiny (B, CO_P) reduction, stays in this jit) --
    n = float(B * HW)
    mean = jnp.sum(s1, axis=(0, 2)) / n                        # (CO_P,)
    ex2 = jnp.sum(s2, axis=(0, 2)) / n
    var = jnp.maximum(ex2 - mean * mean, 0.0)                  # biased variance
    gamma_p = jnp.pad(gamma.astype(jnp.float32), (0, CO_P - Cout))
    beta_p = jnp.pad(beta.astype(jnp.float32), (0, CO_P - Cout))
    inv = jax.lax.rsqrt(var + 1e-5)
    scale = (gamma_p * inv).reshape(CO_P, 1)
    shift = (beta_p - mean * gamma_p * inv).reshape(CO_P, 1)

    # --- pass 2: normalize + ReLU, emitted directly in channels-leading layout
    thw = _hw_tile(HW)
    out = pl.pallas_call(
        bn_relu_kernel,
        grid_spec=pltpu.PrefetchScalarGridSpec(
            num_scalar_prefetch=0,
            grid=(B, HW // thw),
            in_specs=[
                pl.BlockSpec((1, CO_P, thw), lambda b, j: (b, 0, j)),
                pl.BlockSpec((CO_P, 1), lambda b, j: (0, 0)),
                pl.BlockSpec((CO_P, 1), lambda b, j: (0, 0)),
            ],
            out_specs=pl.BlockSpec((1, CO_P, thw), lambda b, j: (b, 0, j)),
        ),
        out_shape=jax.ShapeDtypeStruct((B, CO_P, HW), jnp.float32),
        compiler_params=pltpu.CompilerParams(
            dimension_semantics=("parallel", "parallel"),
            vmem_limit_bytes=32 * 1024 * 1024),
    )(y, scale, shift)

    # Channels already lead: free reshape gives NCHW.  The padded-channel
    # slice only exists when Cout % 8 != 0 (never for CTCNet's layer widths).
    out = out.reshape(B, CO_P, H, W)
    if CO_P != Cout:
        out = out[:, :Cout]
    return out


# --------------------------------------------------------------------------
# Pure-JAX reference mirroring PyTorch Conv2d(+bias) + BatchNorm2d(train) + ReLU
# (keeps the bias to demonstrate it is a no-op under train-mode BN).
# --------------------------------------------------------------------------
def _reference(x_nchw, weight_oihw, bias, gamma, beta):
    y = jax.lax.conv_general_dilated(
        x_nchw, weight_oihw, window_strides=(1, 1),
        padding=((1, 1), (1, 1)),
        dimension_numbers=("NCHW", "OIHW", "NCHW"))
    y = y + bias.reshape(1, -1, 1, 1)
    mean = y.mean(axis=(0, 2, 3), keepdims=True)
    var = ((y - mean) ** 2).mean(axis=(0, 2, 3), keepdims=True)
    y = (y - mean) * jax.lax.rsqrt(var + 1e-5)
    y = y * gamma.reshape(1, -1, 1, 1) + beta.reshape(1, -1, 1, 1)
    return jnp.maximum(y, 0.0)


if __name__ == "__main__":
    B, Cin, Cout, H, W = 2, 4, 8, 16, 16

    key = jax.random.PRNGKey(0)
    kx, kw_, kb = jax.random.split(key, 3)
    x = jax.random.normal(kx, (B, Cin, H, W), dtype=jnp.float32)
    weight = 0.1 * jax.random.normal(kw_, (Cout, Cin, 3, 3), dtype=jnp.float32)
    bias = 0.1 * jax.random.normal(kb, (Cout,), dtype=jnp.float32)
    gamma = jnp.ones((Cout,), jnp.float32)   # nn.BatchNorm2d default weight
    beta = jnp.zeros((Cout,), jnp.float32)   # nn.BatchNorm2d default bias

    ref = _reference(x, weight, bias, gamma, beta)

    # Full-precision mode (f32 operands, f32 intermediate) — tight tolerance,
    # validates the im2col/shift/mask indexing exactly.
    out_f32 = conv_bn_relu_forward(x, weight, bias, gamma, beta, use_bf16=False)
    out_f32 = jax.block_until_ready(out_f32)
    assert out_f32.shape == (B, Cout, H, W)
    assert jnp.allclose(out_f32, ref, atol=1e-4, rtol=1e-4), \
        float(jnp.max(jnp.abs(out_f32 - ref)))

    # Grouped-tap path (the large-Cin strategy), exercised at the toy shape.
    out_grp = conv_bn_relu_forward(x, weight, bias, gamma, beta,
                                   use_bf16=False, taps_per_group=3)
    out_grp = jax.block_until_ready(out_grp)
    assert jnp.allclose(out_grp, ref, atol=1e-4, rtol=1e-4), \
        float(jnp.max(jnp.abs(out_grp - ref)))

    # Production/default mode: bf16 MXU operands + bf16 pre-BN intermediate
    # (BN statistics still in f32) — looser tolerance by construction.
    out_bf16 = conv_bn_relu_forward(x, weight, bias, gamma, beta)
    out_bf16 = jax.block_until_ready(out_bf16)
    assert out_bf16.shape == (B, Cout, H, W)
    assert jnp.allclose(out_bf16, ref, atol=5e-2, rtol=5e-2), \
        float(jnp.max(jnp.abs(out_bf16 - ref)))

    print("KERNEL_OK")
</pallas_src>

<mosaic_0001>
module attributes {stable_mosaic.version = 11 : i64} {
  func.func @conv_stats_kernel(%arg0: i32, %arg1: memref<1x4x384xf32, #tpu.memory_space<vmem>>, %arg2: memref<8x36xf32, #tpu.memory_space<vmem>>, %arg3: memref<2x256xf32, #tpu.memory_space<vmem>>, %arg4: memref<1x8x256xf32, #tpu.memory_space<vmem>>, %arg5: memref<1x8x1xf32, #tpu.memory_space<vmem>>, %arg6: memref<1x8x1xf32, #tpu.memory_space<vmem>>, %arg7: memref<36x256xf32, #tpu.memory_space<vmem>>) attributes {dimension_semantics = [#tpu.dimension_semantics<parallel>], iteration_bounds = array<i64: 2>, scalar_prefetch = 0 : i64, scratch_operands = 1 : i64, tpu.core_type = #tpu.core_type<tc>, window_params = [{transform_indices = @transform_0, window_bounds = array<i64: 1, 4, 384>}, {pipeline_mode = #tpu.pipeline_mode<synchronous>, transform_indices = @transform_1, window_bounds = array<i64: 8, 36>}, {pipeline_mode = #tpu.pipeline_mode<synchronous>, transform_indices = @transform_2, window_bounds = array<i64: 2, 256>}, {transform_indices = @transform_3, window_bounds = array<i64: 1, 8, 256>}, {transform_indices = @transform_4, window_bounds = array<i64: 1, 8, 1>}, {transform_indices = @transform_5, window_bounds = array<i64: 1, 8, 1>}]} {
    %c0 = arith.constant 0 : index
    %c0_0 = arith.constant 0 : index
    %c0_1 = arith.constant 0 : index
    %0 = vector.load %arg1[%c0, %c0_0, %c0_1] : memref<1x4x384xf32, #tpu.memory_space<vmem>>, vector<1x4x256xf32>
    %1 = vector.shape_cast %0 : vector<1x4x256xf32> to vector<4x256xf32>
    %c0_2 = arith.constant 0 : index
    %c0_3 = arith.constant 0 : index
    %2 = vector.load %arg3[%c0_2, %c0_3] : memref<2x256xf32, #tpu.memory_space<vmem>>, vector<1x256xf32>
    %3 = vector.broadcast %2 : vector<1x256xf32> to vector<4x256xf32>
    %4 = arith.mulf %1, %3 : vector<4x256xf32>
    %c0_4 = arith.constant 0 : index
    %c0_5 = arith.constant 0 : index
    %5 = vector.load %arg7[%c0_4, %c0_5] : memref<36x256xf32, #tpu.memory_space<vmem>>, vector<4x256xf32>
    tpu.vector_store %arg7[%c0_4, %c0_5], %4 {strides = array<i32>} : memref<36x256xf32, #tpu.memory_space<vmem>>, vector<4x256xf32>,
    %c0_6 = arith.constant 0 : index
    %c0_7 = arith.constant 0 : index
    %c1 = arith.constant 1 : index
    %6 = vector.load %arg1[%c0_6, %c0_7, %c1] : memref<1x4x384xf32, #tpu.memory_space<vmem>>, vector<1x4x256xf32>
    %7 = vector.shape_cast %6 : vector<1x4x256xf32> to vector<4x256xf32>
    %c4 = arith.constant 4 : index
    %c0_8 = arith.constant 0 : index
    %8 = vector.load %arg7[%c4, %c0_8] : memref<36x256xf32, #tpu.memory_space<vmem>>, vector<4x256xf32>
    tpu.vector_store %arg7[%c4, %c0_8], %7 {strides = array<i32>} : memref<36x256xf32, #tpu.memory_space<vmem>>, vector<4x256xf32>,
    %c0_9 = arith.constant 0 : index
    %c0_10 = arith.constant 0 : index
    %c2 = arith.constant 2 : index
    %9 = vector.load %arg1[%c0_9, %c0_10, %c2] : memref<1x4x384xf32, #tpu.memory_space<vmem>>, vector<1x4x256xf32>
    %10 = vector.shape_cast %9 : vector<1x4x256xf32> to vector<4x256xf32>
    %c1_11 = arith.constant 1 : index
    %c0_12 = arith.constant 0 : index
    %11 = vector.load %arg3[%c1_11, %c0_12] : memref<2x256xf32, #tpu.memory_space<vmem>>, vector<1x256xf32>
    %12 = vector.broadcast %11 : vector<1x256xf32> to vector<4x256xf32>
    %13 = arith.mulf %10, %12 : vector<4x256xf32>
    %c8 = arith.constant 8 : index
    %c0_13 = arith.constant 0 : index
    %14 = vector.load %arg7[%c8, %c0_13] : memref<36x256xf32, #tpu.memory_space<vmem>>, vector<4x256xf32>
    tpu.vector_store %arg7[%c8, %c0_13], %13 {strides = array<i32>} : memref<36x256xf32, #tpu.memory_space<vmem>>, vector<4x256xf32>,
    %c0_14 = arith.constant 0 : index
    %c0_15 = arith.constant 0 : index
    %c16 = arith.constant 16 : index
    %15 = vector.load %arg1[%c0_14, %c0_15, %c16] : memref<1x4x384xf32, #tpu.memory_space<vmem>>, vector<1x4x256xf32>
    %16 = vector.shape_cast %15 : vector<1x4x256xf32> to vector<4x256xf32>
    %c0_16 = arith.constant 0 : index
    %c0_17 = arith.constant 0 : index
    %17 = vector.load %arg3[%c0_16, %c0_17] : memref<2x256xf32, #tpu.memory_space<vmem>>, vector<1x256xf32>
    %18 = vector.broadcast %17 : vector<1x256xf32> to vector<4x256xf32>
    %19 = arith.mulf %16, %18 : vector<4x256xf32>
    %c12 = arith.constant 12 : index
    %c0_18 = arith.constant 0 : index
    %20 = vector.load %arg7[%c12, %c0_18] : memref<36x256xf32, #tpu.memory_space<vmem>>, vector<4x256xf32>
    tpu.vector_store %arg7[%c12, %c0_18], %19 {strides = array<i32>} : memref<36x256xf32, #tpu.memory_space<vmem>>, vector<4x256xf32>,
    %c0_19 = arith.constant 0 : index
    %c0_20 = arith.constant 0 : index
    %c17 = arith.constant 17 : index
    %21 = vector.load %arg1[%c0_19, %c0_20, %c17] : memref<1x4x384xf32, #tpu.memory_space<vmem>>, vector<1x4x256xf32>
    %22 = vector.shape_cast %21 : vector<1x4x256xf32> to vector<4x256xf32>
    %c16_21 = arith.constant 16 : index
    %c0_22 = arith.constant 0 : index
    %23 = vector.load %arg7[%c16_21, %c0_22] : memref<36x256xf32, #tpu.memory_space<vmem>>, vector<4x256xf32>
    tpu.vector_store %arg7[%c16_21, %c0_22], %22 {strides = array<i32>} : memref<36x256xf32, #tpu.memory_space<vmem>>, vector<4x256xf32>,
    %c0_23 = arith.constant 0 : index
    %c0_24 = arith.constant 0 : index
    %c18 = arith.constant 18 : index
    %24 = vector.load %arg1[%c0_23, %c0_24, %c18] : memref<1x4x384xf32, #tpu.memory_space<vmem>>, vector<1x4x256xf32>
    %25 = vector.shape_cast %24 : vector<1x4x256xf32> to vector<4x256xf32>
    %c1_25 = arith.constant 1 : index
    %c0_26 = arith.constant 0 : index
    %26 = vector.load %arg3[%c1_25, %c0_26] : memref<2x256xf32, #tpu.memory_space<vmem>>, vector<1x256xf32>
    %27 = vector.broadcast %26 : vector<1x256xf32> to vector<4x256xf32>
    %28 = arith.mulf %25, %27 : vector<4x256xf32>
    %c20 = arith.constant 20 : index
    %c0_27 = arith.constant 0 : index
    %29 = vector.load %arg7[%c20, %c0_27] : memref<36x256xf32, #tpu.memory_space<vmem>>, vector<4x256xf32>
    tpu.vector_store %arg7[%c20, %c0_27], %28 {strides = array<i32>} : memref<36x256xf32, #tpu.memory_space<vmem>>, vector<4x256xf32>,
    %c0_28 = arith.constant 0 : index
    %c0_29 = arith.constant 0 : index
    %c32 = arith.constant 32 : index
    %30 = vector.load %arg1[%c0_28, %c0_29, %c32] : memref<1x4x384xf32, #tpu.memory_space<vmem>>, vector<1x4x256xf32>
    %31 = vector.shape_cast %30 : vector<1x4x256xf32> to vector<4x256xf32>
    %c0_30 = arith.constant 0 : index
    %c0_31 = arith.constant 0 : index
    %32 = vector.load %arg3[%c0_30, %c0_31] : memref<2x256xf32, #tpu.memory_space<vmem>>, vector<1x256xf32>
    %33 = vector.broadcast %32 : vector<1x256xf32> to vector<4x256xf32>
    %34 = arith.mulf %31, %33 : vector<4x256xf32>
    %c24 = arith.constant 24 : index
    %c0_32 = arith.constant 0 : index
    %35 = vector.load %arg7[%c24, %c0_32] : memref<36x256xf32, #tpu.memory_space<vmem>>, vector<4x256xf32>
    tpu.vector_store %arg7[%c24, %c0_32], %34 {strides = array<i32>} : memref<36x256xf32, #tpu.memory_space<vmem>>, vector<4x256xf32>,
    %c0_33 = arith.constant 0 : index
    %c0_34 = arith.constant 0 : index
    %c33 = arith.constant 33 : index
    %36 = vector.load %arg1[%c0_33, %c0_34, %c33] : memref<1x4x384xf32, #tpu.memory_space<vmem>>, vector<1x4x256xf32>
    %37 = vector.shape_cast %36 : vector<1x4x256xf32> to vector<4x256xf32>
    %c28 = arith.constant 28 : index
    %c0_35 = arith.constant 0 : index
    %38 = vector.load %arg7[%c28, %c0_35] : memref<36x256xf32, #tpu.memory_space<vmem>>, vector<4x256xf32>
    tpu.vector_store %arg7[%c28, %c0_35], %37 {strides = array<i32>} : memref<36x256xf32, #tpu.memory_space<vmem>>, vector<4x256xf32>,
    %c0_36 = arith.constant 0 : index
    %c0_37 = arith.constant 0 : index
    %c34 = arith.constant 34 : index
    %39 = vector.load %arg1[%c0_36, %c0_37, %c34] : memref<1x4x384xf32, #tpu.memory_space<vmem>>, vector<1x4x256xf32>
    %40 = vector.shape_cast %39 : vector<1x4x256xf32> to vector<4x256xf32>
    %c1_38 = arith.constant 1 : index
    %c0_39 = arith.constant 0 : index
    %41 = vector.load %arg3[%c1_38, %c0_39] : memref<2x256xf32, #tpu.memory_space<vmem>>, vector<1x256xf32>
    %42 = vector.broadcast %41 : vector<1x256xf32> to vector<4x256xf32>
    %43 = arith.mulf %40, %42 : vector<4x256xf32>
    %c32_40 = arith.constant 32 : index
    %c0_41 = arith.constant 0 : index
    %44 = vector.load %arg7[%c32_40, %c0_41] : memref<36x256xf32, #tpu.memory_space<vmem>>, vector<4x256xf32>
    tpu.vector_store %arg7[%c32_40, %c0_41], %43 {strides = array<i32>} : memref<36x256xf32, #tpu.memory_space<vmem>>, vector<4x256xf32>,
    %c0_42 = arith.constant 0 : index
    %c0_43 = arith.constant 0 : index
    %45 = vector.load %arg2[%c0_42, %c0_43] : memref<8x36xf32, #tpu.memory_space<vmem>>, vector<8x36xf32>
    %c0_44 = arith.constant 0 : index
    %c0_45 = arith.constant 0 : index
    %46 = vector.load %arg7[%c0_44, %c0_45] : memref<36x256xf32, #tpu.memory_space<vmem>>, vector<36x256xf32>
    %cst = arith.constant dense<0.000000e+00> : vector<8x256xf32>
    %47 = tpu.matmul %45, %46, %cst {dimension_numbers = #tpu.dot_dimension_numbers<[1], [0], [0], [1], [0, 0, 1, 1], [], []>} : vector<8x36xf32>, vector<36x256xf32>, vector<8x256xf32> -> vector<8x256xf32>
    %c0_46 = arith.constant 0 : index
    %c0_47 = arith.constant 0 : index
    %c0_48 = arith.constant 0 : index
    %48 = vector.load %arg4[%c0_46, %c0_47, %c0_48] : memref<1x8x256xf32, #tpu.memory_space<vmem>>, vector<1x8x256xf32>
    %49 = vector.shape_cast %48 : vector<1x8x256xf32> to vector<8x256xf32>
    %50 = vector.shape_cast %47 : vector<8x256xf32> to vector<1x8x256xf32>
    tpu.vector_store %arg4[%c0_46, %c0_47, %c0_48], %50 {strides = array<i32>} : memref<1x8x256xf32, #tpu.memory_space<vmem>>, vector<1x8x256xf32>,
    %cst_49 = arith.constant dense<0.000000e+00> : vector<8xf32>
    %51 = vector.multi_reduction <add>, %47, %cst_49 [1] : vector<8x256xf32> to vector<8xf32>
    %52 = vector.shape_cast %51 : vector<8xf32> to vector<8x1xf32>
    %c0_50 = arith.constant 0 : index
    %c0_51 = arith.constant 0 : index
    %c0_52 = arith.constant 0 : index
    %53 = vector.load %arg5[%c0_50, %c0_51, %c0_52] : memref<1x8x1xf32, #tpu.memory_space<vmem>>, vector<1x8x1xf32>
    %54 = vector.shape_cast %53 : vector<1x8x1xf32> to vector<8x1xf32>
    %55 = vector.shape_cast %52 : vector<8x1xf32> to vector<1x8x1xf32>
    tpu.vector_store %arg5[%c0_50, %c0_51, %c0_52], %55 {strides = array<i32>} : memref<1x8x1xf32, #tpu.memory_space<vmem>>, vector<1x8x1xf32>,
    %56 = arith.mulf %47, %47 : vector<8x256xf32>
    %cst_53 = arith.constant dense<0.000000e+00> : vector<8xf32>
    %57 = vector.multi_reduction <add>, %56, %cst_53 [1] : vector<8x256xf32> to vector<8xf32>
    %58 = vector.shape_cast %57 : vector<8xf32> to vector<8x1xf32>
    %c0_54 = arith.constant 0 : index
    %c0_55 = arith.constant 0 : index
    %c0_56 = arith.constant 0 : index
    %59 = vector.load %arg6[%c0_54, %c0_55, %c0_56] : memref<1x8x1xf32, #tpu.memory_space<vmem>>, vector<1x8x1xf32>
    %60 = vector.shape_cast %59 : vector<1x8x1xf32> to vector<8x1xf32>
    %61 = vector.shape_cast %58 : vector<8x1xf32> to vector<1x8x1xf32>
    tpu.vector_store %arg6[%c0_54, %c0_55, %c0_56], %61 {strides = array<i32>} : memref<1x8x1xf32, #tpu.memory_space<vmem>>, vector<1x8x1xf32>,
    return
  }
  func.func @transform_0(%arg0: i32) -> (i32, i32, i32) {
    %c0_i32 = arith.constant 0 : i32
    %c0_i32_0 = arith.constant 0 : i32
    %c0_i32_1 = arith.constant 0 : i32
    return %arg0, %c0_i32, %c0_i32_0 : i32, i32, i32
  }
  func.func @transform_1(%arg0: i32) -> (i32, i32) {
    %c0_i32 = arith.constant 0 : i32
    %c0_i32_0 = arith.constant 0 : i32
    %c0_i32_1 = arith.constant 0 : i32
    return %c0_i32, %c0_i32_0 : i32, i32
  }
  func.func @transform_2(%arg0: i32) -> (i32, i32) {
    %c0_i32 = arith.constant 0 : i32
    %c0_i32_0 = arith.constant 0 : i32
    %c0_i32_1 = arith.constant 0 : i32
    return %c0_i32, %c0_i32_0 : i32, i32
  }
  func.func @transform_3(%arg0: i32) -> (i32, i32, i32) {
    %c0_i32 = arith.constant 0 : i32
    %c0_i32_0 = arith.constant 0 : i32
    %c0_i32_1 = arith.constant 0 : i32
    return %arg0, %c0_i32, %c0_i32_0 : i32, i32, i32
  }
  func.func @transform_4(%arg0: i32) -> (i32, i32, i32) {
    %c0_i32 = arith.constant 0 : i32
    %c0_i32_0 = arith.constant 0 : i32
    %c0_i32_1 = arith.constant 0 : i32
    return %arg0, %c0_i32, %c0_i32_0 : i32, i32, i32
  }
  func.func @transform_5(%arg0: i32) -> (i32, i32, i32) {
    %c0_i32 = arith.constant 0 : i32
    %c0_i32_0 = arith.constant 0 : i32
    %c0_i32_1 = arith.constant 0 : i32
    return %arg0, %c0_i32, %c0_i32_0 : i32, i32, i32
  }
}

module attributes {stable_mosaic.version = 11 : i64} {
  func.func @bn_relu_kernel(%arg0: i32, %arg1: i32, %arg2: memref<1x8x256xf32, #tpu.memory_space<vmem>>, %arg3: memref<8x1xf32, #tpu.memory_space<vmem>>, %arg4: memref<8x1xf32, #tpu.memory_space<vmem>>, %arg5: memref<1x8x256xf32, #tpu.memory_space<vmem>>) attributes {dimension_semantics = [#tpu.dimension_semantics<parallel>, #tpu.dimension_semantics<parallel>], iteration_bounds = array<i64: 2, 1>, scalar_prefetch = 0 : i64, scratch_operands = 0 : i64, tpu.core_type = #tpu.core_type<tc>, window_params = [{transform_indices = @transform_0, window_bounds = array<i64: 1, 8, 256>}, {pipeline_mode = #tpu.pipeline_mode<synchronous>, transform_indices = @transform_1, window_bounds = array<i64: 8, 1>}, {pipeline_mode = #tpu.pipeline_mode<synchronous>, transform_indices = @transform_2, window_bounds = array<i64: 8, 1>}, {transform_indices = @transform_3, window_bounds = array<i64: 1, 8, 256>}]} {
    %c0 = arith.constant 0 : index
    %c0_0 = arith.constant 0 : index
    %c0_1 = arith.constant 0 : index
    %0 = vector.load %arg2[%c0, %c0_0, %c0_1] : memref<1x8x256xf32, #tpu.memory_space<vmem>>, vector<1x8x256xf32>
    %1 = vector.shape_cast %0 : vector<1x8x256xf32> to vector<8x256xf32>
    %c0_2 = arith.constant 0 : index
    %c0_3 = arith.constant 0 : index
    %2 = vector.load %arg3[%c0_2, %c0_3] : memref<8x1xf32, #tpu.memory_space<vmem>>, vector<8x1xf32>
    %3 = vector.broadcast %2 : vector<8x1xf32> to vector<8x256xf32>
    %4 = arith.mulf %1, %3 : vector<8x256xf32>
    %c0_4 = arith.constant 0 : index
    %c0_5 = arith.constant 0 : index
    %5 = vector.load %arg4[%c0_4, %c0_5] : memref<8x1xf32, #tpu.memory_space<vmem>>, vector<8x1xf32>
    %6 = vector.broadcast %5 : vector<8x1xf32> to vector<8x256xf32>
    %7 = arith.addf %4, %6 : vector<8x256xf32>
    %cst = arith.constant 0.000000e+00 : f32
    %8 = vector.broadcast %cst : f32 to vector<8x256xf32>
    %9 = arith.maximumf %7, %8 : vector<8x256xf32>
    %c0_6 = arith.constant 0 : index
    %c0_7 = arith.constant 0 : index
    %c0_8 = arith.constant 0 : index
    %10 = vector.load %arg5[%c0_6, %c0_7, %c0_8] : memref<1x8x256xf32, #tpu.memory_space<vmem>>, vector<1x8x256xf32>
    %11 = vector.shape_cast %10 : vector<1x8x256xf32> to vector<8x256xf32>
    %12 = vector.shape_cast %9 : vector<8x256xf32> to vector<1x8x256xf32>
    tpu.vector_store %arg5[%c0_6, %c0_7, %c0_8], %12 {strides = array<i32>} : memref<1x8x256xf32, #tpu.memory_space<vmem>>, vector<1x8x256xf32>,
    return
  }
  func.func @transform_0(%arg0: i32, %arg1: i32) -> (i32, i32, i32) {
    %c0_i32 = arith.constant 0 : i32
    %c0_i32_0 = arith.constant 0 : i32
    return %arg0, %c0_i32, %arg1 : i32, i32, i32
  }
  func.func @transform_1(%arg0: i32, %arg1: i32) -> (i32, i32) {
    %c0_i32 = arith.constant 0 : i32
    %c0_i32_0 = arith.constant 0 : i32
    %c0_i32_1 = arith.constant 0 : i32
    return %c0_i32, %c0_i32_0 : i32, i32
  }
  func.func @transform_2(%arg0: i32, %arg1: i32) -> (i32, i32) {
    %c0_i32 = arith.constant 0 : i32
    %c0_i32_0 = arith.constant 0 : i32
    %c0_i32_1 = arith.constant 0 : i32
    return %c0_i32, %c0_i32_0 : i32, i32
  }
  func.func @transform_3(%arg0: i32, %arg1: i32) -> (i32, i32, i32) {
    %c0_i32 = arith.constant 0 : i32
    %c0_i32_0 = arith.constant 0 : i32
    return %arg0, %c0_i32, %arg1 : i32, i32, i32
  }
}

</mosaic_0001>

<bundles_post_ra>
// kernel: conv_bn_relu_forward.3
= control target key start
LH: loop header
LB: loop body
LE: loop exit
PB: predicated region body
PF: predicated region fallthrough
CT: control target
= control target key end

     0   :  { %s403_s12 = smov 0   ;;  %s405_s13 = smov 0   ;;  %s442_s0 = inlined_call_operand.vmem [shape: f32[2,8,256], index: 0, kind: input, shape index: {}]   ;;  %s443_s1 = inlined_call_operand.vmem [shape: f32[8,1], index: 1, kind: input, shape index: {}]   ;;  %s444_s2 = inlined_call_operand.vmem [shape: f32[8,1], index: 2, kind: input, shape index: {}]   ;;  %s445_s3 = inlined_call_operand.vmem [shape: f32[2,8,256], index: 3, kind: output, shape index: {}]  }
   0x1   :  { %s407_s14 = smov 0  }
   0x2 LB: > { %s25_s15 = sadd.s32 1, %s376_s13  ;;  %p323_p0 = scmp.ge.s32.totalorder %s380_s14, 1  ;;  %s380_s14 = sphi %s407_s14, %s13_s14   ;;  %s376_s13 = sphi %s405_s13, %s447_s13   ;;  %s372_s12 = sphi %s403_s12, %s446_s12  }
   0x3   : > { %p27_p1 = scmp.ge.s32.totalorder %s25_s15, 2  ;;  %p158_p2 = scmp.lt.s32.totalorder %s380_s14, 3 }
   0x5   : > { %s449_s15 = smov (%p27_p1, %s25_s15), 0  ;;  %p159_p3 = pnand %p323_p0, %p158_p2 }
   0x6   : > { %v212_v0 = vld [vmem:[%s443_s1] sm:$0xff] (!%p159_p3)  ;;  %v382_v1 = vmov (!%p159_p3), 0   ;;  %p191_p4 = scmp.lt.s32.totalorder (!%p159_p3), %s372_s12, 1 }
   0x7   : > { %162 = sbr.rel (%p159_p3) target bundleno = 145 (0x91), region = 32  ;;  %357 = vset.pattern.permute.xlu0 (!%p159_p3), %v382_v1  ;;  %v220_v2 = vld [vmem:[%s444_s2] sm:$0xff] (!%p159_p3) }
   0x8   : > { %215 = vperm.xlu0 (!%p159_p3), %357, %v212_v0  }
   0xc   : > { %223 = vperm.xlu0 (!%p159_p3), %357, %v220_v2  }
   0xe   : > { %s451_s12 = smov (!%p191_p4, %s372_s12), 1 }
   0xf   : > { %s330_s20 = sshll.u32 %s451_s12, 4 }
  0x10   : > { %s198_s23 = scalar_lea.vmem %s442_s0, %s330_s20  ;;  %s208_s26 = scalar_lea.vmem %s445_s3, %s330_s20 }
  0x11   : > { %v210_v4 = vld [vmem:[%s198_s23] sm:$0xff]  ;;  %v211_v5 = vld [vmem:[%s198_s23 + $0x8] sm:$0xff] }
  0x87   : > { %v216_v3 = vpop.permute.xlu0 %215 }
  0x88   : > { %v218_v6 = vmul.f32 %v216_v3, %v210_v4  ;;  %v219_v7 = vmul.f32 %v216_v3, %v211_v5 }
  0x8b   : > { %v224_v8 = vpop.permute.xlu0 %223 }
  0x8c   : > { %v226_v9 = vadd.f32 %v224_v8, %v218_v6  ;;  %v227_v10 = vadd.f32 %v224_v8, %v219_v7 }
  0x8e   : > { %v228_v11 = vmax.f32 %v226_v9, 0.0  ;;  %v229_v12 = vmax.f32 %v227_v10, 0.0 }
  0x90   : > { %230 = vst [vmem:[%s208_s26] sm:$0xff] %v228_v11  ;;  %231 = vst [vmem:[%s208_s26 + $0x8] sm:$0xff] %v229_v12 }
  0x91 PF: > { %s13_s14 = sadd.s32 1, %s380_s14   ;;  %s446_s12 = smov %s376_s13 }
  0x92   : > { %p10_p5 = scmp.ge.s32.totalorder %s13_s14, 4   ;;  %s447_s13 = smov %s449_s15 }
  0x94   :  { %12 = sbr.rel (!%p10_p5) target bundleno = 2 (0x2), region = 62 }

// kernel: conv_bn_relu_forward.2
= control target key start
LH: loop header
LB: loop body
LE: loop exit
PB: predicated region body
PF: predicated region fallthrough
CT: control target
= control target key end

     0   :  { %s843_s18 = smov 0   ;;  %s943_s0 = inlined_call_operand.vmem [shape: f32[2,4,384], index: 0, kind: input, shape index: {}]   ;;  %s944_s1 = inlined_call_operand.vmem [shape: f32[8,36], index: 1, kind: input, shape index: {}]   ;;  %s945_s2 = inlined_call_operand.vmem [shape: f32[2,256], index: 2, kind: input, shape index: {}]   ;;  %s946_s3 = inlined_call_operand.vmem [shape: f32[2,8,256], index: 3, kind: output, shape index: {0}]   ;;  %s947_s4 = inlined_call_operand.vmem [shape: f32[2,8,1], index: 4, kind: output, shape index: {1}]   ;;  %s948_s5 = inlined_call_operand.vmem [shape: f32[2,8,1], index: 5, kind: output, shape index: {2}]  }
   0x1 LB: > { %s737_s19 = sadd.s32 4294967295, %s797_s18   ;;  %p741_p0 = scmp.ge.s32.totalorder %s797_s18, 1  ;;  %s797_s18 = sphi %s843_s18, %s16_s18  }
   0x2   : > { %p192_p1 = scmp.lt.s32.totalorder %s797_s18, 3 }
   0x4   : > { %p193_p2 = pnand %p741_p0, %p192_p1 }
   0x5   : > { %v249_v0 = vlaneseq (!%p193_p2)  ;;  %v421_v1 = vld [vmem:[%s945_s2] ss:$2 sm:$0x3] (!%p193_p2)  ;;  %v747_v3 = vld [vmem:[%s945_s2 + $0x1] ss:$2 sm:$0x3] (!%p193_p2) }
   0x6   : > { %196 = sbr.rel (%p193_p2) target bundleno = 650 (0x28a), region = 32  ;;  %v325_v4 = vld [vmem:[%s945_s2] ss:$2 sm:$0x3] (!%p193_p2)  ;;  %p228_p3 = scmp.lt.s32.totalorder (!%p193_p2), %s737_s19, 1  ;;  %vm301_vm0 = vcmask (!%p193_p2), 15360  }
   0x7   : > { %v250_v2 = vshrl.u32 (!%p193_p2), %v249_v0, 7  ;;  %v748_v7 = vld [vmem:[%s945_s2 + $0x1] ss:$2 sm:$0x3] (!%p193_p2)  ;;  %s799_s9 = smov (!%p193_p2), 32   ;;  %s800_s10 = smov (!%p193_p2), 2  }
   0x8   : > { %v749_v12 = vld [vmem:[%s945_s2 + $0x1] ss:$2 sm:$0x3] (!%p193_p2)  ;;  %s801_s11 = smov (!%p193_p2), 16   ;;  %s802_s12 = smov (!%p193_p2), 18   ;;  %vm339_vm1 = vcmask (!%p193_p2), 130048  }
   0x9   : > { %v251_v5 = vsub.s32 (!%p193_p2), 0, %v250_v2  ;;  %v255_v6 = vsub.s32 (!%p193_p2), 1, %v250_v2  ;;  %s803_s13 = smov (!%p193_p2), 34   ;;  %s804_s14 = smov (!%p193_p2), 127   ;;  %vm396_vm2 = vcmask (!%p193_p2), 146432   ;;  %vm435_vm3 = vcmask (!%p193_p2), 261120  }
   0xa   : > { %s805_s15 = smov (!%p193_p2), 111   ;;  %s806_s16 = smov (!%p193_p2), 95   ;;  %v247_v30 = vld [vmem:[%s945_s2] ss:$2 sm:$0x3] (!%p193_p2)  ;;  %vm277_vm4 = vcmask (!%p193_p2), 1039360  }
   0xb   : > { %v426_v8 = vrot.slane (!%p193_p2), %v421_v1, %v251_v5  ;;  %v430_v9 = vrot.slane (!%p193_p2), %v421_v1, %v255_v6  ;;  %v292_v10 = vrot.slane (!%p193_p2), %v747_v3, %v251_v5  ;;  %v296_v11 = vrot.slane (!%p193_p2), %v747_v3, %v255_v6  ;;  %s807_s21 = smov (!%p193_p2), 126   ;;  %s808_s22 = smov (!%p193_p2), 96  }
   0xc   : > { %v330_v13 = vrot.slane (!%p193_p2), %v325_v4, %v251_v5  ;;  %v334_v14 = vrot.slane (!%p193_p2), %v325_v4, %v255_v6  ;;  %v387_v15 = vrot.slane (!%p193_p2), %v748_v7, %v251_v5  ;;  %v391_v16 = vrot.slane (!%p193_p2), %v748_v7, %v255_v6  ;;  %s809_s23 = smov (!%p193_p2), 112   ;;  %s810_s24 = smov (!%p193_p2), 110  }
   0xd   : > { %s950_s19 = smov (!%p228_p3, %s737_s19), 1  ;;  %v431_v17 = vcombine.low %v426_v8, %v430_v9  ;;  %v297_v18 = vcombine.low %v292_v10, %v296_v11  ;;  %v483_v19 = vrot.slane %v749_v12, %v251_v5  ;;  %v487_v22 = vrot.slane %v749_v12, %v255_v6  ;;  %s811_s25 = smov 94  }
   0xe   : > { %s764_s30 = smul.u32 12, %s950_s19  ;;  %v335_v20 = vcombine.low %v330_v13, %v334_v14  ;;  %v392_v21 = vcombine.low %v387_v15, %v391_v16  ;;  %v252_v31 = vrot.slane %v247_v30, %v251_v5  ;;  %v256_v32 = vrot.slane %v247_v30, %v255_v6  ;;  %s755_s28 = sshll.u32 %s950_s19, 4 }
   0xf   : > { %432 = vrot.lane.b32.xlu1 %v431_v17, %s799_s9  ;;  %298 = vrot.lane.b32.xlu0 %v297_v18, %s800_s10  ;;  %v488_v23 = vcombine.low %v483_v19, %v487_v22  ;;  %vm373_vm5 = vcmask 908288   ;;  %vm492_vm6 = vcmask 277504   ;;  %vm469_vm7 = vcmask 777216   ;;  %s237_s6 = scalar_lea.vmem %s946_s3, %s755_s28  ;;  %s745_s7 = sshll.u32 %s950_s19, 3 }
  0x10   : > { %s872_s8 = scalar_lea.vmem %s943_s0, %s764_s30  ;;  %v257_v33 = vcombine.low %v252_v31, %v256_v32  ;;  %v812_v22 = vmov 0.0   ;;  %vm412_vm8 = vcmask 900096   ;;  %vm316_vm9 = vcmask 1031168   ;;  %s241_s10 = scalar_lea.vmem %s947_s4, %s745_s7 }
  0x11   : > { %v875_v24 = vld [vmem:[%s872_s8] sm:$0xff]  ;;  %v787_v25 = vld [vmem:[%s872_s8 + $0x8] ss:$0 sps:$4 sm:$0xff]   ;;  %600 = vmatprep.mubr.f32.mxu0 %v812_v22  ;;  %vm355_vm10 = vcmask 916480   ;;  %vm450_vm11 = vcmask 785408   ;;  %vm507_vm12 = vcmask 769024  }
  0x12   : > { %v881_v26 = vcombine.low %v875_v24, %v875_v24  ;;  %v366_v27 = vcombine.high %v875_v24, %v875_v24  ;;  %v363_v28 = vld [vmem:[%s872_s8 + $0x8] sm:$0xf]  ;;  %v259_v34 = vmul.f32 %v875_v24, %v257_v33  ;;  %vm529_vm13 = vcmask 1043456  }
  0x13   : > { %336 = vrot.lane.b32.xlu0 %v335_v20, %s801_s11  ;;  %393 = vrot.lane.b32.xlu1 %v392_v21, %s802_s12  ;;  %v790_v29 = vld [vmem:[%s872_s8 + $0x8] ss:$0 sps:$4 sm:$0xff]   ;;  %vm525_vm14 = vcmask 293888   ;;  %vm612_vm15 = vcmask 7168  }
  0x14   : > { %v261_v35 = vcombine.high %v259_v34, %v259_v34  ;;  %263 = vst [vmem:[#allocation2] sm:$0xf] %v259_v34  ;;  %v420_v37 = vld [vmem:[%s872_s8 + $0x8] sm:$0xf] }
  0x15   : > { %v285_v39 = vld [vmem:[%s872_s8 + $0x8] sm:$0xf] }
  0x16   : > { %264 = vst [vmem:[#allocation2 + $0x8] sm:$0xf] %v261_v35  ;;  %v381_v47 = vld [vmem:[%s872_s8 + $0x8] sm:$0xf] }
  0x17   : > { %489 = vrot.lane.b32.xlu0 %v488_v23, %s803_s13  ;;  %273 = vrot.lane.b32.xlu1 %v875_v24, %s804_s14  ;;  %v324_v60 = vld [vmem:[%s872_s8 + $0x8] sm:$0xf]  ;;  %s245_s13 = scalar_lea.vmem %s948_s5, %s745_s7 }
  0x18   : > { %v477_v20 = vld [vmem:[%s872_s8 + $0x8] sm:$0xf] }
  0x1b   : > { %275 = vrot.lane.b32.xlu0 %v787_v25, %s804_s14  ;;  %271 = vrot.lane.b32.xlu1 %v881_v26, %s804_s14 }
  0x1f   : > { %369 = vrot.lane.b32.xlu0 %v366_v27, %s805_s15  ;;  %371 = vrot.lane.b32.xlu1 %v363_v28, %s805_s15 }
  0x23   : > { %465 = vrot.lane.b32.xlu0 %v875_v24, %s806_s16  ;;  %467 = vrot.lane.b32.xlu1 %v790_v29, %s806_s16 }
  0x27   : > { %367 = vrot.lane.b32.xlu0 %v875_v24, %s805_s15 }
  0x81   : > { %v433_v36 = vpop.permute.xlu1 %432  ;;  %v299_v38 = vpop.permute.xlu0 %298 }
  0x82   : > { %v434_v40 = vrot.slane %v433_v36, 4  ;;  %v300_v41 = vrot.slane %v299_v38, 4 }
  0x84   : > { %v440_v42 = vmul.f32 %v434_v40, %v420_v37  ;;  %v306_v43 = vmul.f32 %v300_v41, %v285_v39  ;;  %v302_v44 = vsel %vm301_vm0, %v300_v41, %v299_v38  ;;  %v436_v59 = vsel %vm435_vm3, %v434_v40, %v433_v36 }
  0x85   : > { %v337_v45 = vpop.permute.xlu0 %336  ;;  %v394_v46 = vpop.permute.xlu1 %393  ;;  %v305_v50 = vmul.f32 %v302_v44, %v875_v24  ;;  %v439_v2 = vmul.f32 %v436_v59, %v875_v24 }
  0x86   : > { %v338_v48 = vrot.slane %v337_v45, 4  ;;  %v395_v49 = vrot.slane %v394_v46, 4  ;;  %314 = vrot.lane.b32.xlu0 %v306_v43, %s807_s21  ;;  %448 = vrot.lane.b32.xlu1 %v440_v42, %s808_s22 }
  0x87   : > { %v309_v4 = vcombine.high %v305_v50, %v305_v50  ;;  %v443_v15 = vcombine.high %v439_v2, %v439_v2 }
  0x88   : > { %v340_v51 = vsel %vm339_vm1, %v338_v48, %v337_v45  ;;  %v401_v52 = vmul.f32 %v395_v49, %v381_v47  ;;  %v397_v54 = vsel %vm396_vm2, %v395_v49, %v394_v46  ;;  %v344_v3 = vmul.f32 %v338_v48, %v324_v60 }
  0x89   : > { %v343_v53 = vmul.f32 %v340_v51, %v875_v24  ;;  %v490_v55 = vpop.permute.xlu0 %489  ;;  %v274_v56 = vpop.permute.xlu1 %273  ;;  %v400_v58 = vmul.f32 %v397_v54, %v875_v24 }
  0x8a   : > { %310 = vrot.lane.b32.xlu0 %v305_v50, %s807_s21  ;;  %v405_v57 = vcombine.low %v401_v52, %v401_v52  ;;  %v491_v1 = vrot.slane %v490_v55, 4  ;;  %v348_v9 = vcombine.low %v344_v3, %v344_v3 }
  0x8b   : > { %351 = vrot.lane.b32.xlu1 %v343_v53, %s809_s23  ;;  %v347_v10 = vcombine.low %v343_v53, %v343_v53  ;;  %v404_v16 = vcombine.low %v400_v58, %v400_v58 }
  0x8c   : > { %v493_v8 = vsel %vm492_vm6, %v491_v1, %v490_v55  ;;  %v497_v21 = vmul.f32 %v491_v1, %v477_v20 }
  0x8d   : > { %v276_v61 = vpop.permute.xlu0 %275  ;;  %v272_v62 = vpop.permute.xlu1 %271  ;;  %v496_v13 = vmul.f32 %v493_v8, %v875_v24 }
  0x8e   : > { %408 = vrot.lane.b32.xlu0 %v400_v58, %s810_s24  ;;  %v279_v63 = vsel %vm277_vm4, %v274_v56, %v276_v61  ;;  %v278_v0 = vsel %vm277_vm4, %v272_v62, %v274_v56 }
  0x8f   : > { %410 = vrot.lane.b32.xlu1 %v405_v57, %s810_s24  ;;  %283 = vst [vmem:[#allocation2 + $0x8] sm:$0xf0] %v279_v63  ;;  %282 = vst [vmem:[#allocation2] sm:$0xf0] %v278_v0  ;;  %v500_v18 = vcombine.high %v496_v13, %v496_v13  ;;  %v514_v63 = vld [vmem:[%s944_s1] sm:$0xff] }
  0x91   : > { %v370_v5 = vpop.permute.xlu0 %369  ;;  %v372_v6 = vpop.permute.xlu1 %371 }
  0x92   : > { %444 = vrot.lane.b32.xlu0 %v439_v2, %s808_s22  ;;  %v375_v7 = vsel %vm373_vm5, %v370_v5, %v372_v6 }
  0x93   : > { %312 = vrot.lane.b32.xlu1 %v309_v4, %s807_s21  ;;  %379 = vst [vmem:[#allocation2 + $0x28] sm:$0xf] %v375_v7 }
  0x95   : > { %v466_v11 = vpop.permute.xlu0 %465  ;;  %v468_v12 = vpop.permute.xlu1 %467 }
  0x96   : > { %353 = vrot.lane.b32.xlu0 %v348_v9, %s809_s23  ;;  %v471_v14 = vsel %vm469_vm7, %v466_v11, %v468_v12  ;;  %v516_v45 = vld [vmem:[#allocation2 + $0x8] sm:$0xff]  ;;  %v515_v49 = vld [vmem:[#allocation2] sm:$0xff] }
  0x97   : > { %349 = vrot.lane.b32.xlu1 %v347_v10, %s809_s23  ;;  %475 = vst [vmem:[#allocation2 + $0x38] sm:$0xf0] %v471_v14 }
  0x99   : > { %v368_v17 = vpop.permute.xlu0 %367 }
  0x9a   : > { %446 = vrot.lane.b32.xlu0 %v443_v15, %s808_s22  ;;  %v374_v19 = vsel %vm373_vm5, %v368_v17, %v370_v5 }
  0x9b   : > { %406 = vrot.lane.b32.xlu1 %v404_v16, %s810_s24  ;;  %378 = vst [vmem:[#allocation2 + $0x20] sm:$0xf] %v374_v19 }
  0x9e   : > { %503 = vrot.lane.b32.xlu0 %v500_v18, %s811_s25 }
  0x9f   : > { %463 = vrot.lane.b32.xlu1 %v881_v26, %s806_s16 }
  0xa2   : > { %501 = vrot.lane.b32.xlu0 %v496_v13, %s811_s25 }
  0xa3   : > { %505 = vrot.lane.b32.xlu1 %v497_v21, %s811_s25 }
  0xf8   : > { %v315_v23 = vpop.permute.xlu0 %314  ;;  %v449_v24 = vpop.permute.xlu1 %448 }
  0xfc   : > { %v311_v25 = vpop.permute.xlu0 %310 }
  0xfd   : > { %v352_v27 = vpop.permute.xlu1 %351 }
 0x100   : > { %v409_v28 = vpop.permute.xlu0 %408 }
 0x101   : > { %v411_v29 = vpop.permute.xlu1 %410 }
 0x102   : > { %v414_v30 = vsel %vm412_vm8, %v409_v28, %v411_v29 }
 0x103   : > { %418 = vst [vmem:[#allocation2 + $0x28] sm:$0xf0] %v414_v30 }
 0x104   : > { %v445_v31 = vpop.permute.xlu0 %444 }
 0x105   : > { %v313_v32 = vpop.permute.xlu1 %312 }
 0x106   : > { %v317_v33 = vsel %vm316_vm9, %v311_v25, %v313_v32  ;;  %v318_v26 = vsel %vm316_vm9, %v313_v32, %v315_v23 }
 0x107   : > { %321 = vst [vmem:[#allocation2 + $0x10] sm:$0xf] %v317_v33  ;;  %322 = vst [vmem:[#allocation2 + $0x18] sm:$0xf] %v318_v26 }
 0x108   : > { %v354_v34 = vpop.permute.xlu0 %353 }
 0x109   : > { %v357_v35 = vsel %vm355_vm10, %v352_v27, %v354_v34  ;;  %v350_v36 = vpop.permute.xlu1 %349 }
 0x10a   : > { %361 = vst [vmem:[#allocation2 + $0x18] sm:$0xf0] %v357_v35  ;;  %v356_v37 = vsel %vm355_vm10, %v350_v36, %v352_v27  ;;  %v520_v55 = vld [vmem:[#allocation2 + $0x28] sm:$0xff] }
 0x10b   : > { %360 = vst [vmem:[#allocation2 + $0x10] sm:$0xf0] %v356_v37 }
 0x10c   : > { %v447_v38 = vpop.permute.xlu0 %446 }
 0x10d   : > { %v451_v39 = vsel %vm450_vm11, %v445_v31, %v447_v38  ;;  %v452_v40 = vsel %vm450_vm11, %v447_v38, %v449_v24  ;;  %v407_v41 = vpop.permute.xlu1 %406 }
 0x10e   : > { %455 = vst [vmem:[#allocation2 + $0x30] sm:$0xf] %v451_v39  ;;  %456 = vst [vmem:[#allocation2 + $0x38] sm:$0xf] %v452_v40  ;;  %v413_v42 = vsel %vm412_vm8, %v407_v41, %v409_v28 }
 0x10f   : > { %417 = vst [vmem:[#allocation2 + $0x20] sm:$0xf0] %v413_v42 }
 0x110   : > { %v504_v43 = vpop.permute.xlu0 %503 }
 0x111   : > { %v464_v44 = vpop.permute.xlu1 %463  ;;  %v518_v46 = vld [vmem:[#allocation2 + $0x18] sm:$0xff] }
 0x112   : > { %v470_v47 = vsel %vm469_vm7, %v464_v44, %v466_v11  ;;  %v756_v48 = vpack.c.bf16 %v518_v46, %v516_v45  ;;  %v517_v50 = vld [vmem:[#allocation2 + $0x10] sm:$0xff] }
 0x113   : > { %474 = vst [vmem:[#allocation2 + $0x30] sm:$0xf0] %v470_v47  ;;  %v758_v51 = vpack.c.bf16 %v517_v50, %v515_v49 }
 0x114   : > { %v502_v52 = vpop.permute.xlu0 %501  ;;  %757 = vmatprep.subr.bf16.mxu0 %v756_v48 }
 0x115   : > { %v508_v53 = vsel %vm507_vm12, %v502_v52, %v504_v43  ;;  %v506_v54 = vpop.permute.xlu1 %505  ;;  %759 = vmatpush1.bf16.msra.mxu0 %v758_v51  ;;  %v522_v56 = vld [vmem:[#allocation2 + $0x38] sm:$0xff] }
 0x116   : > { %512 = vst [vmem:[#allocation2 + $0x40] sm:$0xf] %v508_v53  ;;  %v509_v57 = vsel %vm507_vm12, %v504_v43, %v506_v54  ;;  %v760_v58 = vpack.c.bf16 %v522_v56, %v520_v55  ;;  %v519_v59 = vld [vmem:[#allocation2 + $0x20] sm:$0xff] }
 0x117   : > { %513 = vst [vmem:[#allocation2 + $0x48] sm:$0xf] %v509_v57 }
 0x118   : > { %761 = vmatprep.subr.bf16.mxu0 %v760_v58 }
 0x11a   : > { %v521_v60 = vld [vmem:[#allocation2 + $0x30] sm:$0xff] }
 0x11b   : > { %v762_v61 = vpack.c.bf16 %v521_v60, %v519_v59 }
 0x11d   : > { %763 = vmatpush1.bf16.msra.mxu0 %v762_v61  ;;  %v523_v0 = vld [vmem:[#allocation2 + $0x40] sm:$0xf] }
 0x11e   : > { %v524_v62 = vld [vmem:[#allocation2 + $0x48] sm:$0xf] }
 0x11f   : > { %750 = vmatprep.subr.msk.mxu0 %vm529_vm13, %v524_v62 }
 0x121   : > { %751 = vmatpush1.msk.msra.mxu0 %vm529_vm13, %v523_v0 }
 0x122   : > { %752 = vmatmul.mubr.msk.f32.vlgmr.msra.gmra.mrb[0].mxu0 %vm525_vm14, %v514_v63 }
 0x1f5   : > { %v602_v1 = vpop.f32.mrb[0].mxu0 }
 0x1f6   : > { %v604_v2 = vpop.f32.mrb[1].mxu0  ;;  %607 = vst [vmem:[%s237_s6] sm:$0xff] %v602_v1  ;;  %v614_v3 = vmul.f32 %v602_v1, %v602_v1 }
 0x1f7   : > { %608 = vst [vmem:[%s237_s6 + $0x8] sm:$0xff] %v604_v2  ;;  %v615_v4 = vmul.f32 %v604_v2, %v604_v2  ;;  %v609_v5 = vadd.f32 %v604_v2, %v602_v1 }
 0x1f9   : > { %610 = vadd.xlane.f32.xlu1 %v609_v5  ;;  %v616_v6 = vadd.f32 %v615_v4, %v614_v3 }
 0x1fb   : > { %617 = vadd.xlane.f32.xlu0 %v616_v6 }
 0x286   : > { %v611_v7 = vpop.xlane.xlu1 %610 }
 0x287   : > { %613 = vst.msk [vmem:[%s241_s10] sm:$0xff] %vm612_vm15, %v611_v7 }
 0x288   : > { %v618_v8 = vpop.xlane.xlu0 %617 }
 0x289   : > { %619 = vst.msk [vmem:[%s245_s13] sm:$0xff] %vm612_vm15, %v618_v8 }
 0x28a PF: > { %s16_s18 = sadd.s32 1, %s797_s18  }
 0x28b   : > { %p13_p4 = scmp.ge.s32.totalorder %s16_s18, 4  }
 0x28d   :  { %15 = sbr.rel (!%p13_p4) target bundleno = 1 (0x1), region = 87 }

</bundles_post_ra>
